<compile_context>
chip_gen: v7x
topology: tpu7x:2x2x1
jax: 0.10.0
libtpu: 0.0.40
codegen_flags: <defaults>
</compile_context>

<pallas_src>
import jax
import jax.numpy as jnp
from jax import lax
from jax.experimental import pallas as pl
from jax.experimental.pallas import tpu as pltpu

# ---------------- model dims (small, consistent with the module) ----------------
B = 2          # batch
S = 8          # sequence length (>1, so LayerNormalization does NOT take its skip path)
D_MODEL = 32
D_INNER = 64
N_HEAD = 4
D_K = 8
D_V = 8
LN_EPS = 1e-3        # LayerNormalization default eps=0.001
NEG_BIG = -1e30      # finite "masked" bias (exp underflows to exactly 0)
G = N_HEAD * B       # combined (head, batch) attention groups, g = h*B + b (torch order)

# ---- packed parameter-slab geometry (one (128,128) weight slab + one (1,256) misc row) ----
SLAB_ROWS = N_HEAD * D_MODEL          # 128
SLAB_COLS = 128
C_W1 = 0                              # ffn_w1 : rows 0:32,   cols 0:64
C_WO = D_INNER                        # w_o    : rows 0:32,   cols 64:96
C_WH = D_INNER + D_MODEL              # w_heads: rows 0:128,  cols 96:120  (flattened (4*32, 24))
R_W2 = D_MODEL                        # ffn_w2 : rows 32:96,  cols 0:32
M_B1, M_B2, M_FA, M_FB, M_MA, M_MB = 0, 64, 96, 128, 160, 192
MISC_COLS = 256


def _layer_norm(z, gamma, beta, eps=LN_EPS):
    """Replicates PyTorch LayerNormalization: unbiased std, eps added to sigma."""
    d = z.shape[-1]
    mu = jnp.mean(z, axis=-1, keepdims=True)
    var = jnp.sum((z - mu) ** 2, axis=-1, keepdims=True) / (d - 1)  # unbiased (torch.std)
    return ((z - mu) / (jnp.sqrt(var) + eps)) * gamma + beta


# --------------------- fused encoder-layer kernel (whole batch, no grid) ---------------------
def encoder_layer_kernel(x_ref, bias_ref, w_ref, misc_ref, out_ref, attn_ref):
    x = x_ref[...]                                                      # (B*S, D_MODEL)

    # --- static slices of the packed slabs (tile-aligned offsets) ---
    w1 = w_ref[0:D_MODEL, C_W1:C_W1 + D_INNER]                          # (32, 64)
    w2 = w_ref[R_W2:R_W2 + D_INNER, 0:D_MODEL]                          # (64, 32)
    wo = w_ref[0:D_MODEL, C_WO:C_WO + D_MODEL]                          # (32, 32)
    wh = w_ref[:, C_WH:C_WH + 3 * D_K].reshape(N_HEAD, D_MODEL, 3 * D_K)  # (4, 32, 24)

    b1 = misc_ref[:, M_B1:M_B1 + D_INNER]                               # (1, 64)
    b2 = misc_ref[:, M_B2:M_B2 + D_MODEL]                               # (1, 32)
    ffn_a = misc_ref[:, M_FA:M_FA + D_MODEL]
    ffn_b = misc_ref[:, M_FB:M_FB + D_MODEL]
    mha_a = misc_ref[:, M_MA:M_MA + D_MODEL]
    mha_b = misc_ref[:, M_MB:M_MB + D_MODEL]

    # ---------------- PositionWiseFeedForward ----------------
    h = jnp.maximum(jnp.dot(x, w1, preferred_element_type=jnp.float32) + b1, 0.0)   # ReLU
    y = jnp.dot(h, w2, preferred_element_type=jnp.float32) + b2
    ff = _layer_norm(y + x, ffn_a, ffn_b)                               # (B*S, D_MODEL)

    # ---------------- MultiHeadAttention ----------------
    # q|k|v for ALL heads with one head-batched matmul; 1/temper already folded into wq slice.
    ffh = jnp.broadcast_to(ff[None, :, :], (N_HEAD, B * S, D_MODEL))    # (H, B*S, D_MODEL)
    qkv = lax.dot_general(ffh, wh, (((2,), (1,)), ((0,), (0,))),
                          preferred_element_type=jnp.float32)           # (H, B*S, 3*D_K)
    qkv = qkv.reshape(N_HEAD, B, S, 3 * D_K).reshape(G, S, 3 * D_K)     # g = h*B + b (torch order)
    q = qkv[:, :, 0:D_K]
    k = qkv[:, :, D_K:2 * D_K]
    v = qkv[:, :, 2 * D_K:3 * D_K]

    # scores: 'gsd,gtd->gst', batched over g
    s = lax.dot_general(q, k, (((2,), (2,)), ((0,), (0,))),
                        preferred_element_type=jnp.float32)             # (G, S, S)
    s = s + bias_ref[...]                                               # additive mask bias (G,1,S)

    # exact, numerically-stable softmax(dim=-1)
    m = jnp.max(s, axis=-1, keepdims=True)
    e = jnp.exp(s - m)
    attn = e / jnp.sum(e, axis=-1, keepdims=True)                       # (G, S, S)

    # context: 'gst,gtd->gsd', batched over g
    ctx = lax.dot_general(attn, v, (((2,), (1,)), ((0,), (0,))),
                          preferred_element_type=jnp.float32)           # (G, S, D_V)

    # head concat + Linear(no bias) WITHOUT jnp.concatenate:
    #   proj = sum_h ctx_h @ wo[h*D_V:(h+1)*D_V, :]   (head-batched matmul + reduce)
    ctx_h = ctx.reshape(N_HEAD, B, S, D_V).reshape(N_HEAD, B * S, D_V)  # (H, B*S, D_V)
    wo_h = wo.reshape(N_HEAD, D_V, D_MODEL)                             # (H, D_V, D_MODEL)
    proj = lax.dot_general(ctx_h, wo_h, (((2,), (1,)), ((0,), (0,))),
                           preferred_element_type=jnp.float32)          # (H, B*S, D_MODEL)
    proj = jnp.sum(proj, axis=0)                                        # (B*S, D_MODEL)

    out_ref[...] = _layer_norm(proj + ff, mha_a, mha_b)                 # residual = MHA input (= ff)
    attn_ref[...] = attn


# ---------------------------------- wrapper ----------------------------------
@jax.jit
def encoder_layer(x, mask_i32, p):
    """x: (B,S,D_MODEL) f32; mask_i32: (B,1,S) int32 (1 == masked key); p: prepared params."""
    # first_feedforward == True path: FFN first, then self-attention.
    # NOTE: LayerNormalization skips normalization when seq_len == 1; here S > 1.
    # TODO(synk): training-time dropout (attn dropout, drop_sequence_sharedmask) is omitted —
    # forward is implemented in eval mode where they are identities.
    x_flat = x.reshape(B * S, D_MODEL)
    # additive mask bias, tiled to the (head, batch) group order g = h*B + b, shape (G, 1, S)
    bias_b = jnp.where(mask_i32[:, 0, :] > 0, NEG_BIG, 0.0).astype(jnp.float32)   # (B, S)
    bias_g = jnp.tile(bias_b, (N_HEAD, 1))[:, None, :]                            # (G, 1, S)

    vmem = pl.BlockSpec(memory_space=pltpu.MemorySpace.VMEM)
    out_flat, attn = pl.pallas_call(
        encoder_layer_kernel,
        out_shape=(
            jax.ShapeDtypeStruct((B * S, D_MODEL), jnp.float32),
            jax.ShapeDtypeStruct((G, S, S), jnp.float32),
        ),
        in_specs=[vmem, vmem, vmem, vmem],
        out_specs=(vmem, vmem),
    )(x_flat, bias_g, p["w_all"], p["misc"])

    out = out_flat.reshape(B, S, D_MODEL)          # contiguous reshape, free
    # attn already has the torch batch layout (n_head*mb_size, len_q, len_k), head-major.
    return out, attn


# ---------------------------------- params ----------------------------------
def make_params(key):
    """Parameters in the PyTorch layout (w_qs/w_ks/w_vs are (n_head, d_model, d_k|d_v))."""
    ks = jax.random.split(key, 8)
    scale = 0.1
    return {
        # PositionWiseFeedForward
        "ffn_w1": scale * jax.random.normal(ks[0], (D_MODEL, D_INNER), jnp.float32),
        "ffn_b1": scale * jax.random.normal(ks[1], (D_INNER,), jnp.float32),
        "ffn_w2": scale * jax.random.normal(ks[2], (D_INNER, D_MODEL), jnp.float32),
        "ffn_b2": scale * jax.random.normal(ks[3], (D_MODEL,), jnp.float32),
        "ffn_ln_a": jnp.ones((D_MODEL,), jnp.float32),
        "ffn_ln_b": jnp.zeros((D_MODEL,), jnp.float32),
        # MultiHeadAttention (PyTorch parameter layout)
        "w_qs": scale * jax.random.normal(ks[4], (N_HEAD, D_MODEL, D_K), jnp.float32),
        "w_ks": scale * jax.random.normal(ks[5], (N_HEAD, D_MODEL, D_K), jnp.float32),
        "w_vs": scale * jax.random.normal(ks[6], (N_HEAD, D_MODEL, D_V), jnp.float32),
        "w_o": scale * jax.random.normal(ks[7], (N_HEAD * D_V, D_MODEL), jnp.float32),
        "mha_ln_a": jnp.ones((D_MODEL,), jnp.float32),
        "mha_ln_b": jnp.zeros((D_MODEL,), jnp.float32),
    }


def prepare_params(params):
    """One-time host-side repack into a single (128,128) weight slab + (1,256) misc row.
    1/temper (= 1/sqrt(d_model), per ScaledDotProductAttention) is folded into the wq block."""
    temper = float(D_MODEL) ** 0.5
    wq = params["w_qs"] / temper                                           # (H, D_MODEL, D_K)
    wh = jnp.concatenate([wq, params["w_ks"], params["w_vs"]], axis=-1)    # (H, D_MODEL, 3*D_K)

    w_all = jnp.zeros((SLAB_ROWS, SLAB_COLS), jnp.float32)
    w_all = w_all.at[0:D_MODEL, C_W1:C_W1 + D_INNER].set(params["ffn_w1"])
    w_all = w_all.at[R_W2:R_W2 + D_INNER, 0:D_MODEL].set(params["ffn_w2"])
    w_all = w_all.at[0:D_MODEL, C_WO:C_WO + D_MODEL].set(params["w_o"])
    w_all = w_all.at[:, C_WH:C_WH + 3 * D_K].set(wh.reshape(N_HEAD * D_MODEL, 3 * D_K))

    misc = jnp.zeros((1, MISC_COLS), jnp.float32)
    misc = misc.at[0, M_B1:M_B1 + D_INNER].set(params["ffn_b1"])
    misc = misc.at[0, M_B2:M_B2 + D_MODEL].set(params["ffn_b2"])
    misc = misc.at[0, M_FA:M_FA + D_MODEL].set(params["ffn_ln_a"])
    misc = misc.at[0, M_FB:M_FB + D_MODEL].set(params["ffn_ln_b"])
    misc = misc.at[0, M_MA:M_MA + D_MODEL].set(params["mha_ln_a"])
    misc = misc.at[0, M_MB:M_MB + D_MODEL].set(params["mha_ln_b"])
    return {"w_all": w_all, "misc": misc}


if __name__ == "__main__":
    key = jax.random.PRNGKey(0)
    k_in, k_p = jax.random.split(key)
    p = prepare_params(make_params(k_p))

    enc_input = jax.random.normal(k_in, (B, S, D_MODEL), jnp.float32)

    # padding-style attention mask (1 == masked key), like the torch ByteTensor mask.
    lengths = jnp.array([S, S - 2], jnp.int32)
    key_pos = jnp.arange(S)[None, None, :]                               # (1, 1, S)
    mask_i32 = (key_pos >= lengths[:, None, None]).astype(jnp.int32)     # (B, 1, S)

    out, attn = encoder_layer(enc_input, mask_i32, p)
    jax.block_until_ready((out, attn))

    assert out.shape == (B, S, D_MODEL)
    assert attn.shape == (N_HEAD * B, S, S)
    assert bool(jnp.isfinite(out).all())
    assert bool(jnp.isfinite(attn).all())
    # softmax rows sum to 1 (exact divide), and masked keys of batch 1 get ~0 weight
    assert float(jnp.abs(jnp.sum(attn, axis=-1) - 1.0).max()) < 1e-5
    assert float(jnp.abs(attn[1::2, :, S - 2:]).max()) < 1e-6
    print("KERNEL_OK")
</pallas_src>

<mosaic_0001>
module attributes {stable_mosaic.version = 11 : i64} {
  func.func @encoder_layer_kernel(%arg0: memref<16x32xf32, #tpu.memory_space<vmem>>, %arg1: memref<8x1x8xf32, #tpu.memory_space<vmem>>, %arg2: memref<128x128xf32, #tpu.memory_space<vmem>>, %arg3: memref<1x256xf32, #tpu.memory_space<vmem>>, %arg4: memref<16x32xf32, #tpu.memory_space<vmem>>, %arg5: memref<8x8x8xf32, #tpu.memory_space<vmem>>) attributes {dimension_semantics = [], scalar_prefetch = 0 : i64, scratch_operands = 0 : i64, tpu.core_type = #tpu.core_type<tc>} {
    %c0 = arith.constant 0 : index
    %c0_0 = arith.constant 0 : index
    %0 = vector.load %arg0[%c0, %c0_0] : memref<16x32xf32, #tpu.memory_space<vmem>>, vector<16x32xf32>
    %c0_1 = arith.constant 0 : index
    %c0_2 = arith.constant 0 : index
    %1 = vector.load %arg2[%c0_1, %c0_2] : memref<128x128xf32, #tpu.memory_space<vmem>>, vector<32x64xf32>
    %c32 = arith.constant 32 : index
    %c0_3 = arith.constant 0 : index
    %2 = vector.load %arg2[%c32, %c0_3] : memref<128x128xf32, #tpu.memory_space<vmem>>, vector<64x32xf32>
    %c0_4 = arith.constant 0 : index
    %c64 = arith.constant 64 : index
    %3 = vector.load %arg2[%c0_4, %c64] : memref<128x128xf32, #tpu.memory_space<vmem>>, vector<32x32xf32>
    %c0_5 = arith.constant 0 : index
    %c96 = arith.constant 96 : index
    %4 = vector.load %arg2[%c0_5, %c96] : memref<128x128xf32, #tpu.memory_space<vmem>>, vector<128x24xf32>
    %5 = vector.shape_cast %4 : vector<128x24xf32> to vector<4x32x24xf32>
    %c0_6 = arith.constant 0 : index
    %c0_7 = arith.constant 0 : index
    %6 = vector.load %arg3[%c0_6, %c0_7] : memref<1x256xf32, #tpu.memory_space<vmem>>, vector<1x64xf32>
    %c0_8 = arith.constant 0 : index
    %c64_9 = arith.constant 64 : index
    %7 = vector.load %arg3[%c0_8, %c64_9] : memref<1x256xf32, #tpu.memory_space<vmem>>, vector<1x32xf32>
    %c0_10 = arith.constant 0 : index
    %c96_11 = arith.constant 96 : index
    %8 = vector.load %arg3[%c0_10, %c96_11] : memref<1x256xf32, #tpu.memory_space<vmem>>, vector<1x32xf32>
    %c0_12 = arith.constant 0 : index
    %c128 = arith.constant 128 : index
    %9 = vector.load %arg3[%c0_12, %c128] : memref<1x256xf32, #tpu.memory_space<vmem>>, vector<1x32xf32>
    %c0_13 = arith.constant 0 : index
    %c160 = arith.constant 160 : index
    %10 = vector.load %arg3[%c0_13, %c160] : memref<1x256xf32, #tpu.memory_space<vmem>>, vector<1x32xf32>
    %c0_14 = arith.constant 0 : index
    %c192 = arith.constant 192 : index
    %11 = vector.load %arg3[%c0_14, %c192] : memref<1x256xf32, #tpu.memory_space<vmem>>, vector<1x32xf32>
    %cst = arith.constant dense<0.000000e+00> : vector<16x64xf32>
    %12 = tpu.matmul %0, %1, %cst {dimension_numbers = #tpu.dot_dimension_numbers<[1], [0], [0], [1], [0, 0, 1, 1], [], []>} : vector<16x32xf32>, vector<32x64xf32>, vector<16x64xf32> -> vector<16x64xf32>
    %13 = vector.broadcast %6 : vector<1x64xf32> to vector<16x64xf32>
    %14 = arith.addf %12, %13 : vector<16x64xf32>
    %cst_15 = arith.constant 0.000000e+00 : f32
    %15 = vector.broadcast %cst_15 : f32 to vector<16x64xf32>
    %16 = arith.maximumf %14, %15 : vector<16x64xf32>
    %cst_16 = arith.constant dense<0.000000e+00> : vector<16x32xf32>
    %17 = tpu.matmul %16, %2, %cst_16 {dimension_numbers = #tpu.dot_dimension_numbers<[1], [0], [0], [1], [0, 0, 1, 1], [], []>} : vector<16x64xf32>, vector<64x32xf32>, vector<16x32xf32> -> vector<16x32xf32>
    %18 = vector.broadcast %7 : vector<1x32xf32> to vector<16x32xf32>
    %19 = arith.addf %17, %18 : vector<16x32xf32>
    %20 = arith.addf %19, %0 : vector<16x32xf32>
    %cst_17 = arith.constant dense<0.000000e+00> : vector<16xf32>
    %21 = vector.multi_reduction <add>, %20, %cst_17 [1] : vector<16x32xf32> to vector<16xf32>
    %22 = vector.shape_cast %21 : vector<16xf32> to vector<16x1xf32>
    %cst_18 = arith.constant 3.200000e+01 : f32
    %23 = vector.broadcast %cst_18 : f32 to vector<16x1xf32>
    %24 = arith.divf %22, %23 : vector<16x1xf32>
    %25 = vector.broadcast %24 : vector<16x1xf32> to vector<16x32xf32>
    %26 = arith.subf %20, %25 : vector<16x32xf32>
    %27 = arith.mulf %26, %26 : vector<16x32xf32>
    %cst_19 = arith.constant dense<0.000000e+00> : vector<16xf32>
    %28 = vector.multi_reduction <add>, %27, %cst_19 [1] : vector<16x32xf32> to vector<16xf32>
    %29 = vector.shape_cast %28 : vector<16xf32> to vector<16x1xf32>
    %cst_20 = arith.constant 3.100000e+01 : f32
    %30 = vector.broadcast %cst_20 : f32 to vector<16x1xf32>
    %31 = arith.divf %29, %30 : vector<16x1xf32>
    %32 = vector.broadcast %24 : vector<16x1xf32> to vector<16x32xf32>
    %33 = arith.subf %20, %32 : vector<16x32xf32>
    %34 = math.sqrt %31 : vector<16x1xf32>
    %cst_21 = arith.constant 1.000000e-03 : f32
    %35 = vector.broadcast %cst_21 : f32 to vector<16x1xf32>
    %36 = arith.addf %34, %35 : vector<16x1xf32>
    %37 = vector.broadcast %36 : vector<16x1xf32> to vector<16x32xf32>
    %38 = arith.divf %33, %37 : vector<16x32xf32>
    %39 = vector.broadcast %8 : vector<1x32xf32> to vector<16x32xf32>
    %40 = arith.mulf %38, %39 : vector<16x32xf32>
    %41 = vector.broadcast %9 : vector<1x32xf32> to vector<16x32xf32>
    %42 = arith.addf %40, %41 : vector<16x32xf32>
    %43 = vector.shape_cast %42 : vector<16x32xf32> to vector<1x16x32xf32>
    %44 = vector.shape_cast %43 : vector<1x16x32xf32> to vector<1x16x32xf32>
    %45 = vector.broadcast %44 : vector<1x16x32xf32> to vector<4x16x32xf32>
    %cst_22 = arith.constant dense<0.000000e+00> : vector<4x16x24xf32>
    %46 = tpu.matmul %45, %5, %cst_22 {dimension_numbers = #tpu.dot_dimension_numbers<[2], [1], [1], [2], [0, 0, 0, 1, 1, 2], [0], [0]>} : vector<4x16x32xf32>, vector<4x32x24xf32>, vector<4x16x24xf32> -> vector<4x16x24xf32>
    %47 = vector.shape_cast %46 : vector<4x16x24xf32> to vector<4x2x8x24xf32>
    %48 = vector.shape_cast %47 : vector<4x2x8x24xf32> to vector<8x8x24xf32>
    %49 = vector.extract_strided_slice %48 {offsets = [0, 0, 0], sizes = [8, 8, 8], strides = [1, 1, 1]} : vector<8x8x24xf32> to vector<8x8x8xf32>
    %50 = vector.extract_strided_slice %48 {offsets = [0, 0, 8], sizes = [8, 8, 8], strides = [1, 1, 1]} : vector<8x8x24xf32> to vector<8x8x8xf32>
    %51 = vector.extract_strided_slice %48 {offsets = [0, 0, 16], sizes = [8, 8, 8], strides = [1, 1, 1]} : vector<8x8x24xf32> to vector<8x8x8xf32>
    %cst_23 = arith.constant dense<0.000000e+00> : vector<8x8x8xf32>
    %52 = tpu.matmul %49, %50, %cst_23 {dimension_numbers = #tpu.dot_dimension_numbers<[2], [2], [1], [1], [0, 0, 0, 1, 1, 1], [0], [0]>} : vector<8x8x8xf32>, vector<8x8x8xf32>, vector<8x8x8xf32> -> vector<8x8x8xf32>
    %c0_24 = arith.constant 0 : index
    %c0_25 = arith.constant 0 : index
    %c0_26 = arith.constant 0 : index
    %53 = vector.load %arg1[%c0_24, %c0_25, %c0_26] : memref<8x1x8xf32, #tpu.memory_space<vmem>>, vector<8x1x8xf32>
    %54 = vector.broadcast %53 : vector<8x1x8xf32> to vector<8x8x8xf32>
    %55 = arith.addf %52, %54 : vector<8x8x8xf32>
    %cst_27 = arith.constant dense<0xFF800000> : vector<8x8xf32>
    %56 = vector.multi_reduction <maximumf>, %55, %cst_27 [2] : vector<8x8x8xf32> to vector<8x8xf32>
    %57 = vector.shape_cast %56 : vector<8x8xf32> to vector<8x8x1xf32>
    %58 = vector.broadcast %57 : vector<8x8x1xf32> to vector<8x8x8xf32>
    %59 = arith.subf %55, %58 : vector<8x8x8xf32>
    %60 = math.exp %59 : vector<8x8x8xf32>
    %cst_28 = arith.constant dense<0.000000e+00> : vector<8x8xf32>
    %61 = vector.multi_reduction <add>, %60, %cst_28 [2] : vector<8x8x8xf32> to vector<8x8xf32>
    %62 = vector.shape_cast %61 : vector<8x8xf32> to vector<8x8x1xf32>
    %63 = vector.broadcast %62 : vector<8x8x1xf32> to vector<8x8x8xf32>
    %64 = arith.divf %60, %63 : vector<8x8x8xf32>
    %cst_29 = arith.constant dense<0.000000e+00> : vector<8x8x8xf32>
    %65 = tpu.matmul %64, %51, %cst_29 {dimension_numbers = #tpu.dot_dimension_numbers<[2], [1], [1], [2], [0, 0, 0, 1, 1, 2], [0], [0]>} : vector<8x8x8xf32>, vector<8x8x8xf32>, vector<8x8x8xf32> -> vector<8x8x8xf32>
    %66 = vector.shape_cast %65 : vector<8x8x8xf32> to vector<4x2x8x8xf32>
    %67 = vector.shape_cast %66 : vector<4x2x8x8xf32> to vector<4x16x8xf32>
    %68 = vector.shape_cast %3 : vector<32x32xf32> to vector<4x8x32xf32>
    %cst_30 = arith.constant dense<0.000000e+00> : vector<4x16x32xf32>
    %69 = tpu.matmul %67, %68, %cst_30 {dimension_numbers = #tpu.dot_dimension_numbers<[2], [1], [1], [2], [0, 0, 0, 1, 1, 2], [0], [0]>} : vector<4x16x8xf32>, vector<4x8x32xf32>, vector<4x16x32xf32> -> vector<4x16x32xf32>
    %cst_31 = arith.constant dense<0.000000e+00> : vector<16x32xf32>
    %70 = vector.multi_reduction <add>, %69, %cst_31 [0] : vector<4x16x32xf32> to vector<16x32xf32>
    %71 = arith.addf %70, %42 : vector<16x32xf32>
    %cst_32 = arith.constant dense<0.000000e+00> : vector<16xf32>
    %72 = vector.multi_reduction <add>, %71, %cst_32 [1] : vector<16x32xf32> to vector<16xf32>
    %73 = vector.shape_cast %72 : vector<16xf32> to vector<16x1xf32>
    %cst_33 = arith.constant 3.200000e+01 : f32
    %74 = vector.broadcast %cst_33 : f32 to vector<16x1xf32>
    %75 = arith.divf %73, %74 : vector<16x1xf32>
    %76 = vector.broadcast %75 : vector<16x1xf32> to vector<16x32xf32>
    %77 = arith.subf %71, %76 : vector<16x32xf32>
    %78 = arith.mulf %77, %77 : vector<16x32xf32>
    %cst_34 = arith.constant dense<0.000000e+00> : vector<16xf32>
    %79 = vector.multi_reduction <add>, %78, %cst_34 [1] : vector<16x32xf32> to vector<16xf32>
    %80 = vector.shape_cast %79 : vector<16xf32> to vector<16x1xf32>
    %cst_35 = arith.constant 3.100000e+01 : f32
    %81 = vector.broadcast %cst_35 : f32 to vector<16x1xf32>
    %82 = arith.divf %80, %81 : vector<16x1xf32>
    %83 = vector.broadcast %75 : vector<16x1xf32> to vector<16x32xf32>
    %84 = arith.subf %71, %83 : vector<16x32xf32>
    %85 = math.sqrt %82 : vector<16x1xf32>
    %cst_36 = arith.constant 1.000000e-03 : f32
    %86 = vector.broadcast %cst_36 : f32 to vector<16x1xf32>
    %87 = arith.addf %85, %86 : vector<16x1xf32>
    %88 = vector.broadcast %87 : vector<16x1xf32> to vector<16x32xf32>
    %89 = arith.divf %84, %88 : vector<16x32xf32>
    %90 = vector.broadcast %10 : vector<1x32xf32> to vector<16x32xf32>
    %91 = arith.mulf %89, %90 : vector<16x32xf32>
    %92 = vector.broadcast %11 : vector<1x32xf32> to vector<16x32xf32>
    %93 = arith.addf %91, %92 : vector<16x32xf32>
    %c0_37 = arith.constant 0 : index
    %c0_38 = arith.constant 0 : index
    %94 = vector.load %arg4[%c0_37, %c0_38] : memref<16x32xf32, #tpu.memory_space<vmem>>, vector<16x32xf32>
    tpu.vector_store %arg4[%c0_37, %c0_38], %93 {strides = array<i32>} : memref<16x32xf32, #tpu.memory_space<vmem>>, vector<16x32xf32>,
    %c0_39 = arith.constant 0 : index
    %c0_40 = arith.constant 0 : index
    %c0_41 = arith.constant 0 : index
    %95 = vector.load %arg5[%c0_39, %c0_40, %c0_41] : memref<8x8x8xf32, #tpu.memory_space<vmem>>, vector<8x8x8xf32>
    tpu.vector_store %arg5[%c0_39, %c0_40, %c0_41], %64 {strides = array<i32>} : memref<8x8x8xf32, #tpu.memory_space<vmem>>, vector<8x8x8xf32>,
    return
  }
}

</mosaic_0001>

<bundles_post_ra>
// kernel: encoder_layer.1
= control target key start
LH: loop header
LB: loop body
LE: loop exit
PB: predicated region body
PF: predicated region fallthrough
CT: control target
= control target key end

     0   :  { %11 = vsyncpa [#allocation3], 0  ;;  %s3435_s0 = inlined_call_operand.vmem [shape: f32[16,32], index: 0, kind: input, shape index: {}]   ;;  %s3436_s1 = inlined_call_operand.vmem [shape: f32[8,1,8], index: 1, kind: input, shape index: {}]   ;;  %s3437_s2 = inlined_call_operand.hbm [shape: f32[128,128], index: 2, kind: input, shape index: {}]   ;;  %s3438_s3 = inlined_call_operand.vmem [shape: f32[1,256], index: 3, kind: input, shape index: {}]   ;;  %s3439_s4 = inlined_call_operand.hbm [shape: f32[16,32], index: 4, kind: output, shape index: {0}]   ;;  %s3440_s5 = inlined_call_operand.hbm [shape: f32[8,8,8], index: 5, kind: output, shape index: {1}]  }
   0x1   :  { %12 = vsyncpa [#allocation4], 0 }
   0x2   :  { %13 = vsyncpa [#allocation7], 0  ;;  %s3027_s18 = smov [#allocation2]   ;;  %s2955_s22 = scalar_lea.hbm %s3437_s2, 2048 }
   0x3   :  { %s23_s19 = sshll.u32 %s3027_s18, 4  ;;  %p2956_p0 = scmp.ne.s32.totalorder %s3437_s2, %s2955_s22  ;;  %s24_s19 = int_to_ptr.vmem [resolvable:$true] %s23_s19 }
   0x4   :  { %p2959_p1 = scmp.lt.u32.totalorder %s2955_s22, %s3437_s2 }
   0x6   :  { %p2961_p2 = pnand %p2959_p1, %p2956_p0 }
   0x8   :  { %2964 = shalt.err (!%p2961_p2)
}
   0x9   :  { %s2965_s27 = scalar_lea.vmem %s24_s19, 2048  ;;  %p2970_p4 = scmp.lt.s32.totalorder %s24_s19, %s24_s19 }
   0xa   :  { %p2966_p3 = scmp.ne.s32.totalorder %s24_s19, %s2965_s27  ;;  %p2971_p5 = scmp.lt.s32.totalorder %s2965_s27, %s2965_s27 }
   0xc   :  { %p2972_p6 = por %p2971_p5, %p2970_p4 }
   0xe   :  { %p2973_p7 = pnand %p2972_p6, %p2966_p3 }
  0x10   :  { %2976 = shalt.err (!%p2973_p7)
}
  0x11   :  { %s3028_s28 = smov 128   ;;  %s3029_s29 = smov 8  }
  0x12   :  { %29 = dma.hbm_to_vmem [thread:$0]  %s3437_s2, 2048, %s24_s19, [#allocation3], %s3028_s28, %s3028_s28, %s3029_s29  }
  0x13   :  { %3021 = dma.done.wait [#allocation3], 2048  }
  0x14   :  { %3022 = vsyncadd [#allocation3], 4294965248  ;;  %vm73_vm0 = vcmask 261120   ;;  %v3084_v0 = vld [vmem:[#allocation2] sm:$0xff]  ;;  %v3086_v1 = vld [vmem:[#allocation2 + $0x8] sm:$0xff]  ;;  %s3030_s12 = smov 64  }
  0x15   :  { %v3088_v2 = vld [vmem:[#allocation2 + $0x10] sm:$0xff]  ;;  %v2799_v3 = vpack.c.bf16 %v3086_v1, %v3084_v0  ;;  %v3092_v4 = vld [vmem:[#allocation2 + $0x18] sm:$0xff]  ;;  %v35_v5 = vld [vmem:[%s3435_s0] sm:$0xff]  ;;  %vm160_vm1 = vcmask 523264   ;;  %v2867_v36 = vpack.i.bf16 %v3086_v1, %v3084_v0  ;;  %vm3033_vm6 = vmmov 0   ;;  %s3035_s8 = smov 112  }
  0x16   :  { %v2803_v6 = vpack.c.bf16 %v3092_v4, %v3088_v2  ;;  %2633 = vmatprep.mubr.msk.f32.mxu0 %vm73_vm0, %v35_v5  ;;  %v41_v7 = vld [vmem:[#allocation2 + $0x20] sm:$0xff]  ;;  %v42_v8 = vld [vmem:[#allocation2 + $0x28] sm:$0xff]  ;;  %v3100_v9 = vld [vmem:[#allocation2 + $0x30] sm:$0xff]  ;;  %v2872_v52 = vpack.i.bf16 %v3092_v4, %v3088_v2  ;;  %vm728_vm7 = vcmask 64512   ;;  %s3037_s2 = smov [#allocation6]  }
  0x17   :  { %2800 = vmatprep.subr.bf16.mxu0 %v2799_v3  ;;  %v2807_v10 = vpack.c.bf16 %v42_v8, %v41_v7  ;;  %v3102_v11 = vld [vmem:[#allocation2 + $0x38] sm:$0xff]  ;;  %v3106_v13 = vld [vmem:[#allocation2 + $0x40] sm:$0xff]  ;;  %v3108_v14 = vld [vmem:[#allocation2 + $0x48] sm:$0xff]  ;;  %v2877_v37 = vpack.i.bf16 %v42_v8, %v41_v7  ;;  %s2471_s9 = sshll.u32 %s3037_s2, 4  ;;  %s2472_s9 = int_to_ptr.vmem [resolvable:$true] %s2471_s9 }
  0x18   :  { %2802 = vmatpush3.bf16.msra.mxu0 %v2799_v3  ;;  %v2811_v12 = vpack.c.bf16 %v3102_v11, %v3100_v9  ;;  %v2815_v15 = vpack.c.bf16 %v3108_v14, %v3106_v13  ;;  %v36_v16 = vld [vmem:[%s3435_s0 + $0x8] sm:$0xff]  ;;  %v47_v17 = vld [vmem:[#allocation2 + $0x50] sm:$0xff]  ;;  %v48_v18 = vld [vmem:[#allocation2 + $0x58] sm:$0xff]  ;;  %s3031_s0 = smov 32   ;;  %v2882_v53 = vpack.i.bf16 %v3102_v11, %v3100_v9  ;;  %v2887_v54 = vpack.i.bf16 %v3108_v14, %v3106_v13  ;;  %s2977_s10 = scalar_lea.vmem %s2472_s9, 1024 }
  0x19   :  { %2804 = vmatprep.subr.bf16.mxu0 %v2803_v6  ;;  %2808 = vmatprep.subr.bf16.mxu1 %v2807_v10  ;;  %v2819_v19 = vpack.c.bf16 %v48_v18, %v47_v17  ;;  %v2487_v20 = vld [vmem:[%s3438_s3] ss:$0 sm:$0xff]  ;;  %v2892_v55 = vpack.i.bf16 %v48_v18, %v47_v17  ;;  %v62_v57 = vld [vmem:[#allocation2 + $0x68] sm:$0xff]  ;;  %v63_v59 = vld [vmem:[#allocation2 + $0x70] sm:$0xff]  ;;  %p2978_p8 = scmp.ne.s32.totalorder %s2472_s9, %s2977_s10  ;;  %p2982_p9 = scmp.lt.s32.totalorder %s2472_s9, %s2472_s9 }
  0x1a   :  { %2810 = vmatpush3.bf16.msra.mxu1 %v2807_v10  ;;  %157 = vrot.lane.b32.xlu0 %v2487_v20, %s3030_s12  ;;  %v61_v56 = vld [vmem:[#allocation2 + $0x60] sm:$0xff]  ;;  %v64_v60 = vld [vmem:[#allocation2 + $0x78] sm:$0xff]  ;;  %p2983_p10 = scmp.lt.s32.totalorder %s2977_s10, %s2977_s10 }
  0x1b   :  { %2812 = vmatprep.subr.bf16.mxu1 %v2811_v12  ;;  %v2897_v58 = vpack.i.bf16 %v62_v57, %v61_v56  ;;  %v2902_v61 = vpack.i.bf16 %v64_v60, %v63_v59  ;;  %v3032_v56 = vmov 0.0  }
  0x1c   :  { %2806 = vmatpush3.bf16.msra.mxu0 %v2803_v6  ;;  %p2984_p11 = por %p2983_p10, %p2982_p9 }
  0x1e   :  { %2814 = vmatpush3.bf16.msra.mxu1 %v2811_v12  ;;  %p2985_p12 = pnand %p2984_p11, %p2978_p8 }
  0x1f   :  { %2634 = vmatmul.mubr.msk.f32.vlgmr.msra.gmra.mrb[0].mxu0 %vm73_vm0, %v36_v16  ;;  %2816 = vmatprep.subr.bf16.mxu1 %v2815_v15 }
  0x22   :  { %2818 = vmatpush3.bf16.msra.mxu1 %v2815_v15 }
  0x23   :  { %2820 = vmatprep.subr.bf16.mxu1 %v2819_v19 }
  0x26   :  { %2822 = vmatpush3.bf16.msra.mxu1 %v2819_v19 }
  0x8c   :  { %v158_v27 = vpop.permute.xlu0 %157 }
  0xf2   :  { %v2635_v21 = vpop.f32.mrb[0].mxu0 }
  0xf3   :  { %v152_v22 = vadd.f32 %v2635_v21, %v2487_v20  ;;  %v146_v23 = vpop.f32.mrb[1].mxu0 }
  0xf4   :  { %v147_v24 = vadd.f32 %v2487_v20, %v146_v23 }
  0xf5   :  { %v156_v26 = vmax.f32 %v152_v22, 0.0 }
  0xf6   :  { %v155_v25 = vmax.f32 %v147_v24, 0.0 }
  0xf8   :  { %2652 = vmatprep.mubr.msk.f32.mxu1 %vm160_vm1, %v155_v25 }
  0xf9   :  { %2653 = vmatmul.mubr.msk.f32.vlgmr.msra.gmra.mrb[0].mxu1 %vm160_vm1, %v156_v26 }
 0x1cc   :  { %v2654_v28 = vpop.f32.mrb[0].mxu1 }
 0x1cd   :  { %v239_v29 = vadd.f32 %v2654_v28, %v158_v27  ;;  %v233_v30 = vpop.f32.mrb[1].mxu1 }
 0x1ce   :  { %v234_v31 = vadd.f32 %v233_v30, %v158_v27 }
 0x1cf   :  { %v243_v32 = vadd.f32 %v239_v29, %v36_v16 }
 0x1d0   :  { %v242_v33 = vadd.f32 %v234_v31, %v35_v5 }
 0x1d1   :  { %v247_v34 = vsel %vm73_vm0, %v243_v32, 0.0 }
 0x1d2   :  { %248 = vadd.xlane.f32.xlu1 %v247_v34  ;;  %v244_v35 = vsel %vm73_vm0, %v242_v33, 0.0 }
 0x1d3   :  { %245 = vadd.xlane.f32.xlu0 %v244_v35 }
 0x1e3   :  { %2868 = vrot.lane.b32.xlu1 %v2867_v36, %s3031_s0 }
 0x1e9   :  { %2878 = vrot.lane.b32.xlu0 %v2877_v37, %s3031_s0 }
 0x25f   :  { %v249_v38 = vpop.xlane.xlu1 %248 }
 0x260   :  { %v252_v39 = vmul.f32 0.03125, %v249_v38  ;;  %v246_v40 = vpop.xlane.xlu0 %245 }
 0x261   :  { %v251_v41 = vmul.f32 0.03125, %v246_v40 }
 0x262   :  { %v3126_v42 = vsub.f32 %v243_v32, %v252_v39 }
 0x263   :  { %v3128_v43 = vsub.f32 %v242_v33, %v251_v41  ;;  %v2869_v44 = vpop.permute.xlu1 %2868 }
 0x264   :  { %v256_v45 = vmul.f32 %v3126_v42, %v3126_v42  ;;  %v2871_v46 = vunpack.i.h.bf16 %v2869_v44  ;;  %v2870_v47 = vunpack.i.l.bf16 %v2869_v44  ;;  %v2879_v5 = vpop.permute.xlu0 %2878  ;;  %v3154_v44 = vld [vmem:[%s3438_s3 + $0x1] ss:$0 sm:$0xff]  ;;  %s3034_s3 = smov 120  }
 0x265   :  { %v255_v49 = vmul.f32 %v3128_v43, %v3128_v43  ;;  %v2881_v7 = vunpack.i.h.bf16 %v2879_v5  ;;  %v2880_v8 = vunpack.i.l.bf16 %v2879_v5 }
 0x266   :  { %v260_v48 = vsel %vm73_vm0, %v256_v45, 0.0  ;;  %v2823_v50 = vpack.c.bf16 %v2871_v46, %v2870_v47 }
 0x267   :  { %261 = vadd.xlane.f32.xlu1 %v260_v48  ;;  %v257_v51 = vsel %vm73_vm0, %v255_v49, 0.0  ;;  %v2831_v13 = vpack.c.bf16 %v2881_v7, %v2880_v8 }
 0x268   :  { %2824 = vmatprep.subr.bf16.mxu0 %v2823_v50 }
 0x269   :  { %2826 = vmatpush3.bf16.msra.mxu0 %v2823_v50 }
 0x26b   :  { %258 = vadd.xlane.f32.xlu1 %v257_v51 }
 0x27c   :  { %2873 = vrot.lane.b32.xlu1 %v2872_v52, %s3031_s0 }
 0x280   :  { %286 = vrot.lane.b32.xlu1 %v2487_v20, %s3031_s0 }
 0x284   :  { %2883 = vrot.lane.b32.xlu1 %v2882_v53, %s3031_s0 }
 0x288   :  { %2888 = vrot.lane.b32.xlu1 %v2887_v54, %s3031_s0 }
 0x28c   :  { %2893 = vrot.lane.b32.xlu1 %v2892_v55, %s3031_s0 }
 0x290   :  { %2898 = vrot.lane.b32.xlu1 %v2897_v58, %s3031_s0 }
 0x294   :  { %2903 = vrot.lane.b32.xlu1 %v2902_v61, %s3031_s0 }
 0x2f4   :  { %v262_v62 = vpop.xlane.xlu1 %261 }
 0x2f5   :  { %v265_v63 = vmul.f32 0.032258064, %v262_v62 }
 0x2f7   :  { %2907 = vrsqrt.f32 %v265_v63  ;;  %vm275_vm2 = vcmp.eq.f32.partialorder %v265_v63, inf  ;;  %v278_v17 = vand.u32 2147483648, %v265_v63  ;;  %vm277_vm3 = vcmp.eq.f32.partialorder %v265_v63, 0.0 }
 0x2f8   :  { %v259_v3 = vpop.xlane.xlu1 %258 }
 0x2f9   :  { %v264_v6 = vmul.f32 0.032258064, %v259_v3 }
 0x2fb   :  { %2909 = vrsqrt.f32 %v264_v6  ;;  %vm268_vm4 = vcmp.eq.f32.partialorder %v264_v6, inf  ;;  %v271_v24 = vand.u32 2147483648, %v264_v6  ;;  %vm270_vm5 = vcmp.eq.f32.partialorder %v264_v6, 0.0 }
 0x2fc   :  { %v2874_v9 = vpop.permute.xlu1 %2873 }
 0x2fd   :  { %v2876_v10 = vunpack.i.h.bf16 %v2874_v9  ;;  %v2875_v11 = vunpack.i.l.bf16 %v2874_v9 }
 0x2ff   :  { %v2827_v12 = vpack.c.bf16 %v2876_v10, %v2875_v11 }
 0x300   :  { %v287_v14 = vpop.permute.xlu1 %286 }
 0x301   :  { %v2908_v15 = vpop.eup %2907  ;;  %2828 = vmatprep.subr.bf16.mxu0 %v2827_v12 }
 0x302   :  { %v274_v16 = vmul.f32 %v2908_v15, %v265_v63  ;;  %2830 = vmatpush3.bf16.msra.mxu0 %v2827_v12 }
 0x303   :  { %2832 = vmatprep.subr.bf16.mxu0 %v2831_v13 }
 0x304   :  { %v276_v18 = vsel %vm275_vm2, %v265_v63, %v274_v16  ;;  %v2884_v19 = vpop.permute.xlu1 %2883 }
 0x305   :  { %v2910_v20 = vpop.eup %2909  ;;  %v279_v21 = vsel %vm277_vm3, %v278_v17, %v276_v18  ;;  %v2886_v46 = vunpack.i.h.bf16 %v2884_v19  ;;  %v2885_v47 = vunpack.i.l.bf16 %v2884_v19  ;;  %v2502_v17 = vld [vmem:[%s3436_s1 + $0x1] ss:$0 sm:$0xff] }
 0x306   :  { %v267_v22 = vmul.f32 %v2910_v20, %v264_v6  ;;  %v281_v23 = vadd.f32 0.001, %v279_v21 }
 0x307   :  { %v2835_v51 = vpack.c.bf16 %v2886_v46, %v2885_v47  ;;  %v2508_v47 = vld [vmem:[%s3436_s1 + $0x7] ss:$0 sm:$0xff] }
 0x308   :  { %v269_v25 = vsel %vm268_vm4, %v264_v6, %v267_v22  ;;  %2911 = vrcp.f32 %v281_v23  ;;  %v2889_v26 = vpop.permute.xlu1 %2888  ;;  %v2503_v22 = vld [vmem:[%s3436_s1 + $0x2] ss:$0 sm:$0xff] }
 0x309   :  { %v272_v27 = vsel %vm270_vm5, %v271_v24, %v269_v25  ;;  %v2891_v28 = vunpack.i.h.bf16 %v2889_v26  ;;  %v2890_v29 = vunpack.i.l.bf16 %v2889_v26  ;;  %v2504_v25 = vld [vmem:[%s3436_s1 + $0x3] ss:$0 sm:$0xff] }
 0x30a   :  { %v280_v30 = vadd.f32 0.001, %v272_v27 }
 0x30b   :  { %v2839_v31 = vpack.c.bf16 %v2891_v28, %v2890_v29 }
 0x30c   :  { %2913 = vrcp.f32 %v280_v30  ;;  %v2894_v32 = vpop.permute.xlu1 %2893  ;;  %v2505_v30 = vld [vmem:[%s3436_s1 + $0x4] ss:$0 sm:$0xff] }
 0x30d   :  { %v2896_v33 = vunpack.i.h.bf16 %v2894_v32  ;;  %v2895_v34 = vunpack.i.l.bf16 %v2894_v32  ;;  %2840 = vmatprep.subr.bf16.mxu1 %v2839_v31 }
 0x30e   :  { %2842 = vmatpush3.bf16.msra.mxu1 %v2839_v31 }
 0x30f   :  { %v2843_v35 = vpack.c.bf16 %v2896_v33, %v2895_v34  ;;  %v2506_v34 = vld [vmem:[%s3436_s1 + $0x5] ss:$0 sm:$0xff] }
 0x310   :  { %v2899_v40 = vpop.permute.xlu1 %2898 }
 0x311   :  { %2844 = vmatprep.subr.bf16.mxu1 %v2843_v35  ;;  %v2900_v50 = vunpack.i.l.bf16 %v2899_v40 }
 0x312   :  { %v2912_v36 = vpop.eup %2911  ;;  %2846 = vmatpush3.bf16.msra.mxu1 %v2843_v35 }
 0x313   :  { %v285_v37 = vmul.f32 %v2912_v36, %v3126_v42  ;;  %v2901_v42 = vunpack.i.h.bf16 %v2899_v40  ;;  %2699 = vmatprep.subr.mxu1 %v3032_v56 }
 0x315   :  { %v290_v41 = vmul.f32 %v287_v14, %v285_v37  ;;  %v2847_v52 = vpack.c.bf16 %v2901_v42, %v2900_v50 }
 0x316   :  { %v2914_v38 = vpop.eup %2913 }
 0x317   :  { %v283_v39 = vmul.f32 %v2914_v38, %v3128_v43  ;;  %v3160_v49 = vadd.f32 %v3154_v44, %v290_v41  ;;  %v2904_v43 = vpop.permute.xlu1 %2903 }
 0x318   :  { %v2906_v53 = vunpack.i.h.bf16 %v2904_v43  ;;  %v2905_v54 = vunpack.i.l.bf16 %v2904_v43 }
 0x319   :  { %v289_v45 = vmul.f32 %v287_v14, %v283_v39  ;;  %v2507_v39 = vld [vmem:[%s3436_s1 + $0x6] ss:$0 sm:$0xff] }
 0x31a   :  { %v2851_v55 = vpack.c.bf16 %v2906_v53, %v2905_v54 }
 0x31b   :  { %v3157_v48 = vadd.f32 %v3154_v44, %v289_v45 }
 0x31d   :  { %2663 = vmatprep.mubr.msk.f32.mxu0 %vm73_vm0, %v3157_v48  ;;  %2685 = vmatprep.mubr.msk.f32.mxu1 %vm73_vm0, %v3157_v48 }
 0x31e   :  { %2664 = vmatmul.mubr.msk.f32.vlgmr.msra.gmra.mrb[2].mxu0 %vm73_vm0, %v3160_v49  ;;  %2686 = vmatmul.mubr.msk.f32.vlgmr.msra.gmra.mrb[2].mxu1 %vm73_vm0, %v3160_v49 }
 0x31f   :  { %2834 = vmatpush3.bf16.msra.mxu0 %v2831_v13  ;;  %2674 = vmatprep.mubr.msk.f32.mxu0 %vm73_vm0, %v3157_v48  ;;  %v2501_v13 = vld [vmem:[%s3436_s1] ss:$0 sm:$0xff]  ;;  %s3036_s1 = smov 96  }
 0x320   :  { %2836 = vmatprep.subr.bf16.mxu0 %v2835_v51  ;;  %2701 = vmatprep.mubr.msk.f32.mxu1 %vm3033_vm6, %v3032_v56 }
 0x323   :  { %2838 = vmatpush3.bf16.msra.mxu0 %v2835_v51 }
 0x324   :  { %2848 = vmatprep.subr.bf16.mxu0 %v2847_v52 }
 0x326   :  { %2675 = vmatmul.mubr.msk.f32.vlgmr.msra.gmra.mrb[4].mxu0 %vm73_vm0, %v3160_v49 }
 0x327   :  { %2850 = vmatpush3.bf16.msra.mxu0 %v2847_v52  ;;  %2696 = vmatprep.mubr.msk.f32.mxu0 %vm73_vm0, %v3157_v48 }
 0x328   :  { %2852 = vmatprep.subr.bf16.mxu0 %v2851_v55 }
 0x32b   :  { %2854 = vmatpush3.bf16.msra.mxu0 %v2851_v55 }
 0x32c   :  { %2709 = vmatprep.subr.mxu0 %v3032_v56 }
 0x32e   :  { %2697 = vmatmul.mubr.msk.f32.vlgmr.msra.gmra.mrb[6].mxu0 %vm73_vm0, %v3160_v49 }
 0x32f   :  { %2711 = vmatprep.mubr.msk.f32.mxu0 %vm3033_vm6, %v3032_v56 }
 0x3f1   :  { %v3184_v57 = vpop.f32.mrb[2].mxu0  ;;  %v3186_v58 = vpop.f32.mrb[2].mxu1 }
 0x3f2   :  { %v3188_v59 = vpop.f32.mrb[3].mxu1  ;;  %804 = vrot.lane.b32.xlu1 %v3184_v57, %s3034_s3  ;;  %v3191_v60 = vpop.f32.mrb[3].mxu0 }
 0x3f3   :  { %726 = vrot.lane.b32.xlu0 %v3191_v60, %s3034_s3 }
 0x3f9   :  { %v3194_v61 = vpop.f32.mrb[4].mxu0 }
 0x3fa   :  { %958 = vrot.lane.b32.xlu1 %v3194_v61, %s3034_s3  ;;  %v3197_v62 = vpop.f32.mrb[5].mxu0 }
 0x3fb   :  { %881 = vrot.lane.b32.xlu0 %v3197_v62, %s3034_s3 }
 0x3fe   :  { %1112 = vrot.lane.b32.xlu1 %v3186_v58, %s3034_s3 }
 0x3ff   :  { %1035 = vrot.lane.b32.xlu0 %v3188_v59, %s3034_s3 }
 0x401   :  { %v3202_v63 = vpop.f32.mrb[6].mxu0 }
 0x402   :  { %1266 = vrot.lane.b32.xlu1 %v3202_v63, %s3034_s3  ;;  %v3205_v3 = vpop.f32.mrb[7].mxu0 }
 0x403   :  { %1189 = vrot.lane.b32.xlu0 %v3205_v3, %s3034_s3 }
 0x464   :  { %v805_v6 = vpop.permute.xlu1 %804 }
 0x465   :  { %v727_v5 = vpop.permute.xlu0 %726 }
 0x466   :  { %2700 = vmatpush3.xpose.msk.msra.mxu1 %vm728_vm7, %v727_v5 }
 0x467   :  { %2704 = vmatprep.subr.mxu1 %v3032_v56 }
 0x469   :  { %2702 = vmatmul.mubr.msk.f32.vlgmr.msra.gmra.mrb[4].mxu1 %vm728_vm7, %v3191_v60 }
 0x46a   :  { %2705 = vmatpush3.xpose.msk.msra.mxu1 %vm728_vm7, %v805_v6  ;;  %2706 = vmatprep.mubr.msk.f32.mxu1 %vm3033_vm6, %v3032_v56 }
 0x46b   :  { %2714 = vmatprep.subr.mxu1 %v3032_v56 }
 0x46c   :  { %v959_v7 = vpop.permute.xlu1 %958 }
 0x46d   :  { %v882_v8 = vpop.permute.xlu0 %881  ;;  %2707 = vmatmul.mubr.msk.f32.vlgmr.msra.gmra.mrb[6].mxu1 %vm728_vm7, %v3184_v57 }
 0x46e   :  { %2710 = vmatpush3.xpose.msk.msra.mxu0 %vm728_vm7, %v882_v8  ;;  %2715 = vmatpush3.xpose.msk.msra.mxu1 %vm728_vm7, %v959_v7 }
 0x46f   :  { %2716 = vmatprep.mubr.msk.f32.mxu1 %vm3033_vm6, %v3032_v56  ;;  %2719 = vmatprep.subr.mxu0 %v3032_v56 }
 0x470   :  { %v1113_v9 = vpop.permute.xlu1 %1112  ;;  %2724 = vmatprep.subr.mxu1 %v3032_v56 }
 0x471   :  { %2712 = vmatmul.mubr.msk.f32.vlgmr.msra.gmra.mrb[8].mxu0 %vm728_vm7, %v3197_v62  ;;  %v1036_v10 = vpop.permute.xlu0 %1035  ;;  %2717 = vmatmul.mubr.msk.f32.vlgmr.msra.gmra.mrb[8].mxu1 %vm728_vm7, %v3194_v61 }
 0x472   :  { %2720 = vmatpush3.xpose.msk.msra.mxu0 %vm728_vm7, %v1036_v10  ;;  %2725 = vmatpush3.xpose.msk.msra.mxu1 %vm728_vm7, %v1113_v9 }
 0x473   :  { %2721 = vmatprep.mubr.msk.f32.mxu0 %vm3033_vm6, %v3032_v56  ;;  %2726 = vmatprep.mubr.msk.f32.mxu1 %vm3033_vm6, %v3032_v56 }
 0x474   :  { %2729 = vmatprep.subr.mxu0 %v3032_v56  ;;  %2734 = vmatprep.subr.mxu1 %v3032_v56  ;;  %v1267_v11 = vpop.permute.xlu1 %1266 }
 0x475   :  { %2722 = vmatmul.mubr.msk.f32.vlgmr.msra.gmra.mrb[10].mxu0 %vm728_vm7, %v3188_v59  ;;  %v1190_v12 = vpop.permute.xlu0 %1189  ;;  %2727 = vmatmul.mubr.msk.f32.vlgmr.msra.gmra.mrb[10].mxu1 %vm728_vm7, %v3186_v58 }
 0x476   :  { %2730 = vmatpush3.xpose.msk.msra.mxu0 %vm728_vm7, %v1190_v12  ;;  %2735 = vmatpush3.xpose.msk.msra.mxu1 %vm728_vm7, %v1267_v11 }
 0x477   :  { %2731 = vmatprep.mubr.msk.f32.mxu0 %vm3033_vm6, %v3032_v56  ;;  %2736 = vmatprep.mubr.msk.f32.mxu1 %vm3033_vm6, %v3032_v56 }
 0x478   :  { %2739 = vmatprep.subr.mxu0 %v3032_v56  ;;  %2744 = vmatprep.subr.mxu1 %v3032_v56 }
 0x479   :  { %2732 = vmatmul.mubr.msk.f32.vlgmr.msra.gmra.mrb[12].mxu0 %vm728_vm7, %v3205_v3  ;;  %2737 = vmatmul.mubr.msk.f32.vlgmr.msra.gmra.mrb[12].mxu1 %vm728_vm7, %v3202_v63 }
 0x47a   :  { %2741 = vmatprep.mubr.msk.f32.mxu0 %vm3033_vm6, %v3032_v56  ;;  %2746 = vmatprep.mubr.msk.f32.mxu1 %vm3033_vm6, %v3032_v56 }
 0x53c   :  { %v799_v14 = vpop.f32.mrb[4].mxu1 }
 0x53d   :  { %v800_v15 = vadd.f32 %v2501_v13, %v799_v14  ;;  %v2703_v16 = vpop.f32.mrb[5].mxu1 }
 0x53f   :  { %v1342_v18 = vsel %vm728_vm7, %v800_v15, -inf }
 0x540   :  { %v876_v19 = vpop.f32.mrb[6].mxu1  ;;  %1343 = vmax.xlane.f32.xlu0 %v1342_v18 }
 0x541   :  { %v877_v20 = vadd.f32 %v2502_v17, %v876_v19  ;;  %v2708_v21 = vpop.f32.mrb[7].mxu1 }
 0x543   :  { %v1345_v23 = vsel %vm728_vm7, %v877_v20, -inf }
 0x544   :  { %v953_v24 = vpop.f32.mrb[8].mxu0  ;;  %v1030_v26 = vpop.f32.mrb[8].mxu1  ;;  %1346 = vmax.xlane.f32.xlu1 %v1345_v23 }
 0x545   :  { %v954_v27 = vadd.f32 %v2503_v22, %v953_v24  ;;  %v2713_v28 = vpop.f32.mrb[9].mxu0  ;;  %v2718_v29 = vpop.f32.mrb[9].mxu1  ;;  %v1031_v31 = vadd.f32 %v2504_v25, %v1030_v26 }
 0x547   :  { %v1348_v32 = vsel %vm728_vm7, %v954_v27, -inf  ;;  %v1351_v41 = vsel %vm728_vm7, %v1031_v31, -inf }
 0x548   :  { %1349 = vmax.xlane.f32.xlu0 %v1348_v32  ;;  %v1107_v33 = vpop.f32.mrb[10].mxu0  ;;  %v1184_v35 = vpop.f32.mrb[10].mxu1 }
 0x549   :  { %v1108_v36 = vadd.f32 %v2505_v30, %v1107_v33  ;;  %v2723_v37 = vpop.f32.mrb[11].mxu0  ;;  %v2728_v38 = vpop.f32.mrb[11].mxu1  ;;  %v1185_v40 = vadd.f32 %v2506_v34, %v1184_v35 }
 0x54b   :  { %v1354_v45 = vsel %vm728_vm7, %v1108_v36, -inf  ;;  %v1357_v53 = vsel %vm728_vm7, %v1185_v40, -inf }
 0x54c   :  { %1352 = vmax.xlane.f32.xlu0 %v1351_v41  ;;  %1355 = vmax.xlane.f32.xlu1 %v1354_v45  ;;  %v1261_v46 = vpop.f32.mrb[12].mxu0  ;;  %v1338_v42 = vpop.f32.mrb[12].mxu1 }
 0x54d   :  { %v1262_v50 = vadd.f32 %v2507_v39, %v1261_v46  ;;  %v2733_v43 = vpop.f32.mrb[13].mxu0  ;;  %v2738_v51 = vpop.f32.mrb[13].mxu1  ;;  %v1339_v52 = vadd.f32 %v2508_v47, %v1338_v42 }
 0x54f   :  { %v1360_v54 = vsel %vm728_vm7, %v1262_v50, -inf  ;;  %v1363_v55 = vsel %vm728_vm7, %v1339_v52, -inf }
 0x550   :  { %1358 = vmax.xlane.f32.xlu0 %v1357_v53  ;;  %1361 = vmax.xlane.f32.xlu1 %v1360_v54 }
 0x554   :  { %1364 = vmax.xlane.f32.xlu0 %v1363_v55 }
 0x561   :  { %1430 = vrot.lane.b32.xlu1 %v3191_v60, %s3035_s8 }
 0x565   :  { %1582 = vrot.lane.b32.xlu1 %v3197_v62, %s3035_s8 }
 0x569   :  { %1658 = vrot.lane.b32.xlu1 %v3194_v61, %s3035_s8 }
 0x56a   :  { %1506 = vrot.lane.b32.xlu0 %v3184_v57, %s3035_s8 }
 0x56d   :  { %1810 = vrot.lane.b32.xlu1 %v3186_v58, %s3035_s8 }
 0x56e   :  { %1734 = vrot.lane.b32.xlu0 %v3188_v59, %s3035_s8 }
 0x5cd   :  { %v1344_v5 = vpop.xlane.xlu0 %1343 }
 0x5ce   :  { %v1366_v6 = vsub.f32 %v800_v15, %v1344_v5 }
 0x5d0   :  { %v1374_v7 = vmul.f32 1.442695, %v1366_v6 }
 0x5d1   :  { %v1347_v8 = vpop.xlane.xlu1 %1346 }
 0x5d2   :  { %2915 = vpow2.f32 %v1374_v7  ;;  %v1367_v60 = vsub.f32 %v877_v20, %v1347_v8 }
 0x5d4   :  { %v1376_v9 = vmul.f32 1.442695, %v1367_v60 }
 0x5d5   :  { %v1350_v62 = vpop.xlane.xlu0 %1349 }
 0x5d6   :  { %2917 = vpow2.f32 %v1376_v9  ;;  %v1368_v10 = vsub.f32 %v954_v27, %v1350_v62 }
 0x5d8   :  { %v1378_v61 = vmul.f32 1.442695, %v1368_v10 }
 0x5d9   :  { %v1353_v11 = vpop.xlane.xlu0 %1352  ;;  %v1356_v12 = vpop.xlane.xlu1 %1355 }
 0x5da   :  { %2919 = vpow2.f32 %v1378_v61  ;;  %v1369_v57 = vsub.f32 %v1031_v31, %v1353_v11  ;;  %v1370_v13 = vsub.f32 %v1108_v36, %v1356_v12 }
 0x5dc   :  { %v3300_v58 = vpop.eup %2915  ;;  %v1380_v14 = vmul.f32 1.442695, %v1369_v57  ;;  %v1382_v59 = vmul.f32 1.442695, %v1370_v13 }
 0x5dd   :  { %v1359_v16 = vpop.xlane.xlu0 %1358  ;;  %v1362_v15 = vpop.xlane.xlu1 %1361  ;;  %v1390_v17 = vsel %vm728_vm7, %v3300_v58, 0.0 }
 0x5de   :  { %2921 = vpow2.f32 %v1380_v14  ;;  %v1371_v18 = vsub.f32 %v1185_v40, %v1359_v16  ;;  %v1372_v19 = vsub.f32 %v1262_v50, %v1362_v15  ;;  %1391 = vadd.xlane.f32.xlu1 %v1390_v17 }
 0x5df   :  { %2923 = vpow2.f32 %v1382_v59 }
 0x5e0   :  { %v2918_v20 = vpop.eup %2917  ;;  %v1384_v21 = vmul.f32 1.442695, %v1371_v18  ;;  %v1386_v22 = vmul.f32 1.442695, %v1372_v19 }
 0x5e1   :  { %v1365_v23 = vpop.xlane.xlu0 %1364  ;;  %v1431_v24 = vpop.permute.xlu1 %1430  ;;  %v1393_v25 = vsel %vm728_vm7, %v2918_v20, 0.0 }
 0x5e2   :  { %2925 = vpow2.f32 %v1384_v21  ;;  %v1373_v26 = vsub.f32 %v1339_v52, %v1365_v23  ;;  %2740 = vmatpush3.msra.mxu0 %v1431_v24  ;;  %1394 = vadd.xlane.f32.xlu0 %v1393_v25 }
 0x5e3   :  { %2927 = vpow2.f32 %v1386_v22  ;;  %2749 = vmatprep.subr.mxu0 %v3032_v56 }
 0x5e4   :  { %v2920_v27 = vpop.eup %2919  ;;  %v1388_v28 = vmul.f32 1.442695, %v1373_v26 }
 0x5e5   :  { %v1507_v29 = vpop.permute.xlu0 %1506  ;;  %v1396_v30 = vsel %vm728_vm7, %v2920_v27, 0.0  ;;  %v1583_v41 = vpop.permute.xlu1 %1582 }
 0x5e6   :  { %2929 = vpow2.f32 %v1388_v28  ;;  %2745 = vmatpush3.msra.mxu1 %v1507_v29  ;;  %1397 = vadd.xlane.f32.xlu1 %v1396_v30 }
 0x5e7   :  { %2754 = vmatprep.subr.mxu1 %v3032_v56 }
 0x5e8   :  { %v3308_v31 = vpop.eup %2921 }
 0x5e9   :  { %v3310_v32 = vpop.eup %2923  ;;  %v1399_v33 = vsel %vm728_vm7, %v3308_v31, 0.0  ;;  %v1659_v45 = vpop.permute.xlu1 %1658 }
 0x5ea   :  { %1400 = vadd.xlane.f32.xlu0 %v1399_v33  ;;  %v1402_v34 = vsel %vm728_vm7, %v3310_v32, 0.0  ;;  %v1735_v47 = vpop.permute.xlu0 %1734 }
 0x5eb   :  { %1403 = vadd.xlane.f32.xlu1 %v1402_v34 }
 0x5ec   :  { %v3316_v35 = vpop.eup %2925 }
 0x5ed   :  { %v3318_v36 = vpop.eup %2927  ;;  %v1405_v37 = vsel %vm728_vm7, %v3316_v35, 0.0  ;;  %v1811_v46 = vpop.permute.xlu1 %1810 }
 0x5ee   :  { %1406 = vadd.xlane.f32.xlu0 %v1405_v37  ;;  %v1408_v38 = vsel %vm728_vm7, %v3318_v36, 0.0 }
 0x5ef   :  { %1409 = vadd.xlane.f32.xlu1 %v1408_v38 }
 0x5f0   :  { %v3324_v39 = vpop.eup %2929 }
 0x5f1   :  { %v1411_v40 = vsel %vm728_vm7, %v3324_v39, 0.0 }
 0x5f2   :  { %1412 = vadd.xlane.f32.xlu0 %v1411_v40 }
 0x600   :  { %1962 = vrot.lane.b32.xlu1 %v3202_v63, %s3035_s8 }
 0x604   :  { %2124 = vrot.lane.b32.xlu1 %v3086_v1, %s3030_s12 }
 0x608   :  { %1886 = vrot.lane.b32.xlu0 %v3205_v3, %s3035_s8  ;;  %2294 = vrot.lane.b32.xlu1 %v3092_v4, %s3030_s12 }
 0x60c   :  { %2039 = vrot.lane.b32.xlu0 %v3084_v0, %s3030_s12 }
 0x610   :  { %2209 = vrot.lane.b32.xlu0 %v3088_v2, %s3030_s12 }
 0x66b   :  { %v1392_v63 = vpop.xlane.xlu1 %1391 }
 0x66c   :  { %2931 = vrcp.f32 %v1392_v63 }
 0x66f   :  { %v1395_v42 = vpop.xlane.xlu0 %1394 }
 0x670   :  { %2933 = vrcp.f32 %v1395_v42 }
 0x673   :  { %v1398_v1 = vpop.xlane.xlu1 %1397 }
 0x674   :  { %2935 = vrcp.f32 %v1398_v1 }
 0x676   :  { %v2932_v3 = vpop.eup %2931 }
 0x677   :  { %v1415_v50 = vmul.f32 %v2932_v3, %v3300_v58  ;;  %v1401_v4 = vpop.xlane.xlu0 %1400 }
 0x678   :  { %2937 = vrcp.f32 %v1401_v4  ;;  %v1404_v43 = vpop.xlane.xlu1 %1403 }
 0x679   :  { %2446 = vst.msk [vmem:[#allocation6] sm:$0xff] %vm728_vm7, %v1415_v50  ;;  %2939 = vrcp.f32 %v1404_v43  ;;  %2742 = vmatmul.mubr.msk.f32.vlgmr.msra.gmra.mrb[14].mxu0 %vm728_vm7, %v1415_v50 }
 0x67a   :  { %v2934_v0 = vpop.eup %2933  ;;  %2750 = vmatpush3.msra.mxu0 %v1583_v41  ;;  %2751 = vmatprep.mubr.msk.f32.mxu0 %vm3033_vm6, %v3032_v56 }
 0x67b   :  { %v1417_v2 = vmul.f32 %v2934_v0, %v2918_v20  ;;  %v1407_v51 = vpop.xlane.xlu0 %1406  ;;  %2759 = vmatprep.subr.mxu0 %v3032_v56 }
 0x67c   :  { %2941 = vrcp.f32 %v1407_v51  ;;  %v1410_v52 = vpop.xlane.xlu1 %1409 }
 0x67d   :  { %2447 = vst.msk [vmem:[#allocation6 + $0x8] sm:$0xff] %vm728_vm7, %v1417_v2  ;;  %2943 = vrcp.f32 %v1410_v52  ;;  %2747 = vmatmul.mubr.msk.f32.vlgmr.msra.gmra.mrb[14].mxu1 %vm728_vm7, %v1417_v2 }
 0x67e   :  { %v2936_v53 = vpop.eup %2935  ;;  %2755 = vmatpush3.msra.mxu1 %v1659_v45  ;;  %2756 = vmatprep.mubr.msk.f32.mxu1 %vm3033_vm6, %v3032_v56 }
 0x67f   :  { %v1419_v54 = vmul.f32 %v2936_v53, %v2920_v27  ;;  %v1413_v55 = vpop.xlane.xlu0 %1412  ;;  %2764 = vmatprep.subr.mxu1 %v3032_v56 }
 0x680   :  { %2945 = vrcp.f32 %v1413_v55  ;;  %v1963_v11 = vpop.permute.xlu1 %1962 }
 0x681   :  { %2448 = vst.msk [vmem:[#allocation6 + $0x10] sm:$0xff] %vm728_vm7, %v1419_v54  ;;  %2752 = vmatmul.mubr.msk.f32.vlgmr.msra.gmra.mrb[16].mxu0 %vm728_vm7, %v1419_v54 }
 0x682   :  { %v2938_v5 = vpop.eup %2937  ;;  %2760 = vmatpush3.msra.mxu0 %v1735_v47  ;;  %2761 = vmatprep.mubr.msk.f32.mxu0 %vm3033_vm6, %v3032_v56 }
 0x683   :  { %v2940_v6 = vpop.eup %2939  ;;  %v1421_v7 = vmul.f32 %v2938_v5, %v3308_v31  ;;  %2769 = vmatprep.subr.mxu0 %v3032_v56  ;;  %v1887_v60 = vpop.permute.xlu0 %1886 }
 0x684   :  { %v1423_v8 = vmul.f32 %v2940_v6, %v3310_v32  ;;  %v2125_v58 = vpop.permute.xlu1 %2124 }
 0x685   :  { %2449 = vst.msk [vmem:[#allocation6 + $0x18] sm:$0xff] %vm728_vm7, %v1421_v7  ;;  %2757 = vmatmul.mubr.msk.f32.vlgmr.msra.gmra.mrb[16].mxu1 %vm728_vm7, %v1421_v7 }
 0x686   :  { %v2942_v9 = vpop.eup %2941  ;;  %2450 = vst.msk [vmem:[#allocation6 + $0x20] sm:$0xff] %vm728_vm7, %v1423_v8  ;;  %2762 = vmatmul.mubr.msk.f32.vlgmr.msra.gmra.mrb[18].mxu0 %vm728_vm7, %v1423_v8  ;;  %2765 = vmatpush3.msra.mxu1 %v1811_v46 }
 0x687   :  { %v2944_v62 = vpop.eup %2943  ;;  %v1425_v10 = vmul.f32 %v2942_v9, %v3316_v35  ;;  %2770 = vmatpush3.msra.mxu0 %v1887_v60  ;;  %2766 = vmatprep.mubr.msk.f32.mxu1 %vm3033_vm6, %v3032_v56  ;;  %v2040_v13 = vpop.permute.xlu0 %2039 }
 0x688   :  { %v1427_v61 = vmul.f32 %v2944_v62, %v3318_v36  ;;  %2771 = vmatprep.mubr.msk.f32.mxu0 %vm3033_vm6, %v3032_v56  ;;  %2774 = vmatprep.subr.mxu1 %v3032_v56  ;;  %v2295_v59 = vpop.permute.xlu1 %2294 }
 0x689   :  { %2451 = vst.msk [vmem:[#allocation6 + $0x28] sm:$0xff] %vm728_vm7, %v1425_v10  ;;  %2767 = vmatmul.mubr.msk.f32.vlgmr.msra.gmra.mrb[18].mxu1 %vm728_vm7, %v1425_v10  ;;  %2779 = vmatprep.subr.mxu0 %v2040_v13 }
 0x68a   :  { %v2946_v12 = vpop.eup %2945  ;;  %2452 = vst.msk [vmem:[#allocation6 + $0x30] sm:$0xff] %vm728_vm7, %v1427_v61  ;;  %2772 = vmatmul.mubr.msk.f32.vlgmr.msra.gmra.mrb[20].mxu0 %vm728_vm7, %v1427_v61  ;;  %2775 = vmatpush3.msra.mxu1 %v1963_v11 }
 0x68b   :  { %v1429_v57 = vmul.f32 %v2946_v12, %v3324_v39  ;;  %2776 = vmatprep.mubr.msk.f32.mxu1 %vm3033_vm6, %v3032_v56  ;;  %2780 = vmatpush3.msra.mxu0 %v2040_v13  ;;  %v2210_v14 = vpop.permute.xlu0 %2209 }
 0x68c   :  { %2784 = vmatprep.subr.mxu1 %v2125_v58  ;;  %2789 = vmatprep.subr.mxu0 %v2210_v14 }
 0x68d   :  { %2453 = vst.msk [vmem:[#allocation6 + $0x38] sm:$0xff] %vm728_vm7, %v1429_v57  ;;  %2777 = vmatmul.mubr.msk.f32.vlgmr.msra.gmra.mrb[20].mxu1 %vm728_vm7, %v1429_v57 }
 0x68e   :  { %2785 = vmatpush3.msra.mxu1 %v2125_v58 }
 0x68f   :  { %2794 = vmatprep.subr.mxu1 %v2295_v59 }
 0x74c   :  { %v1502_v16 = vpop.f32.mrb[14].mxu0 }
 0x74d   :  { %v2743_v15 = vpop.f32.mrb[15].mxu0  ;;  %2781 = vmatprep.mubr.msk.f32.mxu0 %vm728_vm7, %v1502_v16 }
 0x750   :  { %v1578_v17 = vpop.f32.mrb[14].mxu1 }
 0x751   :  { %v2748_v56 = vpop.f32.mrb[15].mxu1  ;;  %2782 = vmatmul.mubr.msk.f32.vlgmr.msra.gmra.mrb[22].mxu0 %vm728_vm7, %v1578_v17 }
 0x752   :  { %2790 = vmatpush3.msra.mxu0 %v2210_v14 }
 0x754   :  { %v1654_v18 = vpop.f32.mrb[16].mxu0 }
 0x755   :  { %v2753_v19 = vpop.f32.mrb[17].mxu0  ;;  %2786 = vmatprep.mubr.msk.f32.mxu1 %vm728_vm7, %v1654_v18 }
 0x758   :  { %v1730_v20 = vpop.f32.mrb[16].mxu1 }
 0x759   :  { %v1806_v21 = vpop.f32.mrb[18].mxu0  ;;  %v2758_v22 = vpop.f32.mrb[17].mxu1  ;;  %2787 = vmatmul.mubr.msk.f32.vlgmr.msra.gmra.mrb[22].mxu1 %vm728_vm7, %v1730_v20 }
 0x75a   :  { %v2763_v23 = vpop.f32.mrb[19].mxu0  ;;  %2791 = vmatprep.mubr.msk.f32.mxu0 %vm728_vm7, %v1806_v21  ;;  %2795 = vmatpush3.msra.mxu1 %v2295_v59 }
 0x75c   :  { %v1882_v24 = vpop.f32.mrb[18].mxu1 }
 0x75d   :  { %v1958_v25 = vpop.f32.mrb[20].mxu0  ;;  %v2768_v26 = vpop.f32.mrb[19].mxu1  ;;  %2792 = vmatmul.mubr.msk.f32.vlgmr.msra.gmra.mrb[24].mxu0 %vm728_vm7, %v1882_v24 }
 0x75e   :  { %v2773_v27 = vpop.f32.mrb[21].mxu0  ;;  %2796 = vmatprep.mubr.msk.f32.mxu1 %vm728_vm7, %v1958_v25 }
 0x760   :  { %v2034_v28 = vpop.f32.mrb[20].mxu1 }
 0x761   :  { %v2778_v29 = vpop.f32.mrb[21].mxu1  ;;  %2797 = vmatmul.mubr.msk.f32.vlgmr.msra.gmra.mrb[24].mxu1 %vm728_vm7, %v2034_v28 }
 0x824   :  { %v2783_v30 = vpop.f32.mrb[22].mxu0 }
 0x825   :  { %v2114_v31 = vpop.f32.mrb[23].mxu0  ;;  %v2385_v33 = vsel %vm73_vm0, %v2783_v30, 0.0 }
 0x826   :  { %v2378_v36 = vsel %vm73_vm0, %v2114_v31, 0.0 }
 0x82c   :  { %v2788_v32 = vpop.f32.mrb[22].mxu1 }
 0x82d   :  { %v2386_v34 = vsel %vm73_vm0, %v2788_v32, 0.0  ;;  %v2199_v35 = vpop.f32.mrb[23].mxu1 }
 0x82e   :  { %v2387_v37 = vadd.f32 %v2386_v34, %v2385_v33  ;;  %v2379_v38 = vsel %vm73_vm0, %v2199_v35, 0.0 }
 0x82f   :  { %v2380_v39 = vadd.f32 %v2379_v38, %v2378_v36 }
 0x830   :  { %v2793_v40 = vpop.f32.mrb[24].mxu0 }
 0x831   :  { %v2388_v41 = vsel %vm73_vm0, %v2793_v40, 0.0  ;;  %v2284_v45 = vpop.f32.mrb[25].mxu0 }
 0x832   :  { %v2389_v46 = vadd.f32 %v2388_v41, %v2387_v37  ;;  %v2381_v47 = vsel %vm73_vm0, %v2284_v45, 0.0 }
 0x833   :  { %v2382_v63 = vadd.f32 %v2381_v47, %v2380_v39 }
 0x834   :  { %v2798_v42 = vpop.f32.mrb[24].mxu1 }
 0x835   :  { %v2390_v1 = vsel %vm73_vm0, %v2798_v42, 0.0  ;;  %v2369_v3 = vpop.f32.mrb[25].mxu1 }
 0x836   :  { %v2391_v50 = vadd.f32 %v2390_v1, %v2389_v46  ;;  %v2383_v4 = vsel %vm73_vm0, %v2369_v3, 0.0 }
 0x837   :  { %v2384_v43 = vadd.f32 %v2383_v4, %v2382_v63 }
 0x838   :  { %v2393_v0 = vadd.f32 %v2391_v50, %v3160_v49 }
 0x839   :  { %v2392_v2 = vadd.f32 %v2384_v43, %v3157_v48 }
 0x83a   :  { %v2397_v51 = vsel %vm73_vm0, %v2393_v0, 0.0 }
 0x83b   :  { %2398 = vadd.xlane.f32.xlu1 %v2397_v51  ;;  %v2394_v52 = vsel %vm73_vm0, %v2392_v2, 0.0 }
 0x83c   :  { %2395 = vadd.xlane.f32.xlu0 %v2394_v52 }
 0x84c   :  { %2434 = vrot.lane.b32.xlu1 %v3154_v44, %s3036_s1 }
 0x8c8   :  { %v2399_v53 = vpop.xlane.xlu1 %2398 }
 0x8c9   :  { %v2401_v54 = vmul.f32 0.03125, %v2399_v53  ;;  %v2396_v55 = vpop.xlane.xlu0 %2395 }
 0x8ca   :  { %v2400_v5 = vmul.f32 0.03125, %v2396_v55 }
 0x8cb   :  { %v2403_v6 = vsub.f32 %v2393_v0, %v2401_v54 }
 0x8cc   :  { %v2402_v7 = vsub.f32 %v2392_v2, %v2400_v5 }
 0x8cd   :  { %v2405_v60 = vmul.f32 %v2403_v6, %v2403_v6 }
 0x8ce   :  { %v2404_v8 = vmul.f32 %v2402_v7, %v2402_v7 }
 0x8cf   :  { %v2409_v48 = vsel %vm73_vm0, %v2405_v60, 0.0 }
 0x8d0   :  { %v2406_v49 = vsel %vm73_vm0, %v2404_v8, 0.0 }
 0x8d1   :  { %2407 = vadd.xlane.f32.xlu0 %v2406_v49 }
 0x8d5   :  { %2410 = vadd.xlane.f32.xlu0 %v2409_v48 }
 0x8eb   :  { %2439 = vrot.lane.b32.xlu0 %v3154_v44, %s3030_s12 }
 0x8ec   :  { %2988 = shalt.err (!%p2985_p12)
}
 0x8ed   :  { %s2989_s13 = scalar_lea.hbm %s3440_s5, 1024 }
 0x8ee   :  { %p2990_p13 = scmp.ne.s32.totalorder %s3440_s5, %s2989_s13  ;;  %p2993_p0 = scmp.lt.u32.totalorder %s2989_s13, %s3440_s5 }
 0x8f0   :  { %p2995_p1 = pnand %p2993_p0, %p2990_p13 }
 0x8f2   :  { %2998 = shalt.err (!%p2995_p1)
}
 0x8f3   :  { %2477 = dma.vmem_to_hbm [thread:$0]  %s2472_s9, 1024, %s3440_s5, [#allocation7], %s3028_s28, %s3028_s28, %s3029_s29   ;;  %v2435_v19 = vpop.permute.xlu1 %2434 }
 0x8f4   :  { %s3038_s5 = smov [#allocation5]  }
 0x8f5   :  { %s2459_s18 = sshll.u32 %s3038_s5, 4  ;;  %s2460_s18 = int_to_ptr.vmem [resolvable:$true] %s2459_s18 }
 0x8f6   :  { %s2999_s19 = scalar_lea.vmem %s2460_s18, 256  ;;  %p3004_p3 = scmp.lt.s32.totalorder %s2460_s18, %s2460_s18 }
 0x8f7   :  { %p3000_p2 = scmp.ne.s32.totalorder %s2460_s18, %s2999_s19  ;;  %p3005_p4 = scmp.lt.s32.totalorder %s2999_s19, %s2999_s19 }
 0x8f9   :  { %p3006_p5 = por %p3005_p4, %p3004_p3 }
 0x8fb   :  { %p3007_p6 = pnand %p3006_p5, %p3000_p2 }
 0x95e   :  { %v2408_v44 = vpop.xlane.xlu0 %2407 }
 0x95f   :  { %v2412_v9 = vmul.f32 0.032258064, %v2408_v44 }
 0x961   :  { %2947 = vrsqrt.f32 %v2412_v9  ;;  %vm2416_vm8 = vcmp.eq.f32.partialorder %v2412_v9, inf  ;;  %v2419_v12 = vand.u32 2147483648, %v2412_v9  ;;  %vm2418_vm9 = vcmp.eq.f32.partialorder %v2412_v9, 0.0 }
 0x962   :  { %v2411_v62 = vpop.xlane.xlu0 %2410 }
 0x963   :  { %v2413_v10 = vmul.f32 0.032258064, %v2411_v62 }
 0x965   :  { %2949 = vrsqrt.f32 %v2413_v10  ;;  %vm2423_vm10 = vcmp.eq.f32.partialorder %v2413_v10, inf  ;;  %v2426_v16 = vand.u32 2147483648, %v2413_v10  ;;  %vm2425_vm11 = vcmp.eq.f32.partialorder %v2413_v10, 0.0 }
 0x966   :  { %v2440_v21 = vpop.permute.xlu0 %2439 }
 0x96b   :  { %v2948_v61 = vpop.eup %2947 }
 0x96c   :  { %v2415_v11 = vmul.f32 %v2948_v61, %v2412_v9 }
 0x96e   :  { %v2417_v57 = vsel %vm2416_vm8, %v2412_v9, %v2415_v11 }
 0x96f   :  { %v2950_v13 = vpop.eup %2949  ;;  %v2420_v58 = vsel %vm2418_vm9, %v2419_v12, %v2417_v57 }
 0x970   :  { %v2422_v14 = vmul.f32 %v2950_v13, %v2413_v10  ;;  %v2428_v59 = vadd.f32 0.001, %v2420_v58 }
 0x972   :  { %v2424_v15 = vsel %vm2423_vm10, %v2413_v10, %v2422_v14  ;;  %2951 = vrcp.f32 %v2428_v59 }
 0x973   :  { %v2427_v17 = vsel %vm2425_vm11, %v2426_v16, %v2424_v15 }
 0x974   :  { %v2429_v56 = vadd.f32 0.001, %v2427_v17 }
 0x976   :  { %2953 = vrcp.f32 %v2429_v56 }
 0x97c   :  { %v2952_v18 = vpop.eup %2951 }
 0x97d   :  { %v2431_v20 = vmul.f32 %v2952_v18, %v2402_v7 }
 0x97f   :  { %v2437_v22 = vmul.f32 %v2435_v19, %v2431_v20 }
 0x980   :  { %v2954_v23 = vpop.eup %2953 }
 0x981   :  { %v2433_v24 = vmul.f32 %v2954_v23, %v2403_v6  ;;  %v2442_v25 = vadd.f32 %v2440_v21, %v2437_v22 }
 0x983   :  { %v2438_v26 = vmul.f32 %v2435_v19, %v2433_v24  ;;  %2444 = vst.msk [vmem:[#allocation5] sm:$0xff] %vm73_vm0, %v2442_v25 }
 0x985   :  { %v2443_v27 = vadd.f32 %v2440_v21, %v2438_v26 }
 0x987   :  { %2445 = vst.msk [vmem:[#allocation5 + $0x8] sm:$0xff] %vm73_vm0, %v2443_v27 }
 0x988   :  { %3010 = shalt.err (!%p3007_p6)
}
 0x989   :  { %s3011_s22 = scalar_lea.hbm %s3439_s4, 256 }
 0x98a   :  { %p3012_p7 = scmp.ne.s32.totalorder %s3439_s4, %s3011_s22  ;;  %p3015_p8 = scmp.lt.u32.totalorder %s3011_s22, %s3439_s4 }
 0x98c   :  { %p3017_p9 = pnand %p3015_p8, %p3012_p7 }
 0x98e   :  { %3020 = shalt.err (!%p3017_p9)
}
 0x98f   :  { %2465 = dma.vmem_to_hbm [thread:$0]  %s2460_s18, 256, %s3439_s4, [#allocation4], %s3028_s28, %s3028_s28, %s3029_s29  }
 0x990   :  { %3023 = dma.done.wait [#allocation4], 256  }
 0x991   :  { %3024 = vsyncadd [#allocation4], 4294967040 }
 0x992   :  { %3025 = dma.done.wait [#allocation7], 1024  }
 0x993   :  { %3026 = vsyncadd [#allocation7], 4294966272 }
 0x994   :  { %2484 = vsyncpa [#allocation3], 1 }
 0x995   :  { %2485 = vsyncpa [#allocation4], 1 }
 0x996   :  { %2486 = vsyncpa [#allocation7], 1 }

</bundles_post_ra>
